<compile_context>
chip_gen: v5e
topology: v5e:2x2
jax: 0.10.0
libtpu: 0.0.40
codegen_flags: <defaults>
</compile_context>

<pallas_src>
import math

import jax
import jax.numpy as jnp
from jax.experimental import pallas as pl
from jax.experimental.pallas import tpu as pltpu

_LN_EPS = 1e-5


def _gelu_tanh(x):
    # TODO(synk): PyTorch nn.GELU() defaults to the exact erf form; the tanh
    # approximation is used here (EUP-friendly on TPU, max abs diff ~1e-3).
    c = math.sqrt(2.0 / math.pi)
    return 0.5 * x * (1.0 + jnp.tanh(c * (x + 0.044715 * x * x * x)))


def _layernorm(z, gamma, beta):
    mu = jnp.mean(z, axis=-1, keepdims=True)
    var = jnp.mean(jnp.square(z - mu), axis=-1, keepdims=True)
    return (z - mu) * jax.lax.rsqrt(var + _LN_EPS) * gamma + beta


# ---------------------------------------------------------------------------
# Kernel 1: batched expert layer  h_e = GELU(LN(x @ W_e + b_e))
# grid = (E, M_tiles, K_tiles)
# ---------------------------------------------------------------------------
def _expert_layer_kernel(x_ref, w_ref, b_ref, g_ref, be_ref, o_ref, acc_ref):
    k = pl.program_id(2)

    @pl.when(k == 0)
    def _():
        acc_ref[...] = jnp.zeros_like(acc_ref)

    acc_ref[...] += jnp.dot(x_ref[...].astype(w_ref.dtype), w_ref[...],
                            preferred_element_type=jnp.float32)

    @pl.when(k == pl.num_programs(2) - 1)
    def _():
        z = acc_ref[...] + b_ref[...]          # bias only in the finalize step
        z = _layernorm(z, g_ref[...], be_ref[...])
        o_ref[...] = _gelu_tanh(z).astype(o_ref.dtype)


# ---------------------------------------------------------------------------
# Kernel 2: last expert layer fused with the MoE weighted combine
#   y[b,:] = sum_e rw[e,b] * GELU(LN(h_e @ W_e + b_e))
# grid = (M_tiles, E, K_tiles)   (m outermost so the combine acc stays resident)
# ---------------------------------------------------------------------------
def _expert_out_combine_kernel(h_ref, w_ref, b_ref, g_ref, be_ref, rw_ref,
                               y_ref, acc_ref, moe_ref):
    e = pl.program_id(1)
    k = pl.program_id(2)
    ne = pl.num_programs(1)
    nk = pl.num_programs(2)

    @pl.when((e == 0) & (k == 0))
    def _():
        moe_ref[...] = jnp.zeros_like(moe_ref)

    @pl.when(k == 0)
    def _():
        acc_ref[...] = jnp.zeros_like(acc_ref)

    acc_ref[...] += jnp.dot(h_ref[...].astype(w_ref.dtype), w_ref[...],
                            preferred_element_type=jnp.float32)

    @pl.when(k == nk - 1)
    def _():
        z = acc_ref[...] + b_ref[...]
        z = _layernorm(z, g_ref[...], be_ref[...])
        moe_ref[...] += rw_ref[...] * _gelu_tanh(z)   # (tm,1) * (tm,N)

    @pl.when((e == ne - 1) & (k == nk - 1))
    def _():
        y_ref[...] = moe_ref[...].astype(y_ref.dtype)


# ---------------------------------------------------------------------------
# Wrappers
# ---------------------------------------------------------------------------
def _pick_tiles(B, K, w_dtype, tm, tk):
    if tm is None:
        tm = B if B <= 256 else 256
    if tk is None:
        tk_cap = 512 if jnp.dtype(w_dtype).itemsize == 2 else 256
        tk = K if K <= tk_cap else tk_cap
    assert B % tm == 0 and (tm % 8 == 0 or tm == B)
    assert K % tk == 0 and tk % 128 == 0
    return tm, tk


def _nbytes(a):
    return a.size * a.dtype.itemsize


def expert_layer(x, W, b, gamma, beta, *, tm=None, tk=None,
                 out_dtype=jnp.float32):
    """Batched expert layer: GELU(LayerNorm(x @ W_e + b_e)) for every expert.

    x : (B, K) shared input, or (E, B, K) per-expert input
    W : (E, K, N) pre-transposed; b/gamma/beta : (E, 1, N)
    returns h : (E, B, N)
    """
    E, K, N = W.shape
    per_expert = x.ndim == 3
    B = x.shape[-2]
    assert x.shape[-1] == K and N % 128 == 0
    tm, tk = _pick_tiles(B, K, W.dtype, tm, tk)
    nm, nk = B // tm, K // tk

    if per_expert:
        x_spec = pl.BlockSpec((None, tm, tk), lambda e, m, k: (e, m, k))
    else:
        x_spec = pl.BlockSpec((tm, tk), lambda e, m, k: (m, k))

    cost = pl.CostEstimate(
        flops=2 * E * B * K * N,
        transcendentals=E * B * N,
        bytes_accessed=(_nbytes(x) * (1 if per_expert else E) + _nbytes(W)
                        + _nbytes(b) + _nbytes(gamma) + _nbytes(beta)
                        + E * B * N * jnp.dtype(out_dtype).itemsize),
    )

    return pl.pallas_call(
        _expert_layer_kernel,
        out_shape=jax.ShapeDtypeStruct((E, B, N), out_dtype),
        grid_spec=pltpu.PrefetchScalarGridSpec(
            num_scalar_prefetch=0,
            grid=(E, nm, nk),
            in_specs=[x_spec,
                      pl.BlockSpec((None, tk, N), lambda e, m, k: (e, k, 0))]
                     + [pl.BlockSpec((None, 1, N), lambda e, m, k: (e, 0, 0))
                        for _ in range(3)],
            out_specs=pl.BlockSpec((None, tm, N), lambda e, m, k: (e, m, 0)),
            scratch_shapes=[pltpu.VMEM((tm, N), jnp.float32)],
        ),
        compiler_params=pltpu.CompilerParams(
            dimension_semantics=("parallel", "parallel", "arbitrary")),
        cost_estimate=cost,
    )(x, W, b, gamma, beta)


def expert_out_and_combine(h, W, b, gamma, beta, route_w, *, tm=None, tk=None,
                           out_dtype=jnp.float32):
    """Last expert layer fused with the MoE combine.

    h : (E, B, K); W : (E, K, N); b/gamma/beta : (E, 1, N)
    route_w : (E, B, 1) routing weights.   returns y : (B, N)
    """
    E, B, K = h.shape
    N = W.shape[-1]
    assert W.shape == (E, K, N) and N % 128 == 0
    tm, tk = _pick_tiles(B, K, W.dtype, tm, tk)
    nm, nk = B // tm, K // tk

    cost = pl.CostEstimate(
        flops=2 * E * B * K * N + 2 * E * B * N,
        transcendentals=E * B * N,
        bytes_accessed=(_nbytes(h) + _nbytes(W) + _nbytes(b) + _nbytes(gamma)
                        + _nbytes(beta) + _nbytes(route_w)
                        + B * N * jnp.dtype(out_dtype).itemsize),
    )

    return pl.pallas_call(
        _expert_out_combine_kernel,
        out_shape=jax.ShapeDtypeStruct((B, N), out_dtype),
        grid_spec=pltpu.PrefetchScalarGridSpec(
            num_scalar_prefetch=0,
            grid=(nm, E, nk),
            in_specs=[pl.BlockSpec((None, tm, tk), lambda m, e, k: (e, m, k)),
                      pl.BlockSpec((None, tk, N), lambda m, e, k: (e, k, 0))]
                     + [pl.BlockSpec((None, 1, N), lambda m, e, k: (e, 0, 0))
                        for _ in range(3)]
                     + [pl.BlockSpec((None, tm, 1), lambda m, e, k: (e, m, 0))],
            out_specs=pl.BlockSpec((tm, N), lambda m, e, k: (m, 0)),
            scratch_shapes=[pltpu.VMEM((tm, N), jnp.float32),   # matmul acc
                            pltpu.VMEM((tm, N), jnp.float32)],  # MoE combine acc
        ),
        compiler_params=pltpu.CompilerParams(
            dimension_semantics=("parallel", "arbitrary", "arbitrary")),
        cost_estimate=cost,
    )(h, W, b, gamma, beta, route_w)


def init_moe_params(key, layers, experts, weight_dtype=jnp.bfloat16):
    """Per-expert MLP params, stacked over experts.

    PyTorch nn.Linear stores weight as (out, in); we build that layout and
    transpose ONCE here (never per forward call) to the MXU-friendly
    (E, in, out) layout, cast to bf16 for the MXU (f32 accumulation in-kernel).
    """
    params = []
    for li in range(len(layers) - 1):
        d_in, d_out = layers[li], layers[li + 1]
        key, kw, kb = jax.random.split(key, 3)
        w_pt = jax.random.normal(kw, (experts, d_out, d_in), jnp.float32)
        w_pt = w_pt / math.sqrt(d_in)
        bias = 0.02 * jax.random.normal(kb, (experts, d_out), jnp.float32)
        params.append(dict(
            W=jnp.transpose(w_pt, (0, 2, 1)).astype(weight_dtype),  # one-time A.T
            b=bias.reshape(experts, 1, d_out),
            gamma=jnp.ones((experts, 1, d_out), jnp.float32),   # LayerNorm weight
            beta=jnp.zeros((experts, 1, d_out), jnp.float32),   # LayerNorm bias
        ))
    return params


def moe_forward(x, weights, params, *, tm=None, tk=None):
    """MoE forward (non-sequential path): einsum('bej,be->bj', experts(x), weights)."""
    # TODO(synk): dropout (p=0.1) is identity in eval mode; training-mode
    # dropout, the resnet/ResWrapper branch, diverse_experts construction and
    # the sequential=True path are not implemented (default config path only).
    E = params[0]['W'].shape[0]
    B = x.shape[0]
    h = x
    for p in params[:-1]:
        h = expert_layer(h, p['W'], p['b'], p['gamma'], p['beta'], tm=tm, tk=tk)
    last = params[-1]
    rw = jnp.transpose(weights, (1, 0)).reshape(E, B, 1).astype(jnp.float32)
    return expert_out_and_combine(h, last['W'], last['b'], last['gamma'],
                                  last['beta'], rw, tm=tm, tk=tk)


# ---------------------------------------------------------------------------
# Plain-JAX reference (same math, per-expert loops, explicit weighted sum)
# ---------------------------------------------------------------------------
def _moe_reference(x, weights, params):
    E = params[0]['W'].shape[0]
    outs = []
    for e in range(E):
        h = x
        for p in params:
            z = jnp.dot(h.astype(p['W'].dtype), p['W'][e],
                        preferred_element_type=jnp.float32) + p['b'][e]
            z = _layernorm(z, p['gamma'][e], p['beta'][e])
            h = _gelu_tanh(z)
        outs.append(h)
    y_stack = jnp.stack(outs, axis=1)                        # (B, E, out_dim)
    return jnp.sum(y_stack * weights[:, :, None], axis=1)    # 'bej,be->bj'


if __name__ == "__main__":
    key = jax.random.PRNGKey(0)
    k_par, k_x, k_w = jax.random.split(key, 3)

    # Small, lane-aligned shapes: config['layers'] = [128, 256, 128], 4 experts.
    B, in_dim, hidden, out_dim, experts = 16, 128, 256, 128, 4
    layers = [in_dim, hidden, out_dim]

    params = init_moe_params(k_par, layers, experts, weight_dtype=jnp.bfloat16)
    x = jax.random.normal(k_x, (B, in_dim), jnp.float32)
    gate_logits = jax.random.normal(k_w, (B, experts), jnp.float32)
    weights = jax.nn.softmax(gate_logits, axis=-1)           # (B, E) routing

    # tm=8 / tk=128 exercise the multi-tile M grid and the K-accumulation path.
    y = moe_forward(x, weights, params, tm=8, tk=128)
    y = jax.block_until_ready(y)

    y_ref = _moe_reference(x, weights, params)
    assert y.shape == (B, out_dim)
    assert jnp.allclose(y, y_ref, atol=5e-3, rtol=5e-3), \
        float(jnp.max(jnp.abs(y - y_ref)))

    print("KERNEL_OK")
</pallas_src>

<mosaic_0001>
module attributes {stable_mosaic.version = 11 : i64} {
  func.func @_expert_layer_kernel(%arg0: i32, %arg1: i32, %arg2: i32, %arg3: memref<8x128xf32, #tpu.memory_space<vmem>>, %arg4: memref<1x128x256xbf16, #tpu.memory_space<vmem>>, %arg5: memref<1x1x256xf32, #tpu.memory_space<vmem>>, %arg6: memref<1x1x256xf32, #tpu.memory_space<vmem>>, %arg7: memref<1x1x256xf32, #tpu.memory_space<vmem>>, %arg8: memref<1x8x256xf32, #tpu.memory_space<vmem>>, %arg9: memref<8x256xf32, #tpu.memory_space<vmem>>) attributes {dimension_semantics = [#tpu.dimension_semantics<parallel>, #tpu.dimension_semantics<parallel>, #tpu.dimension_semantics<arbitrary>], iteration_bounds = array<i64: 4, 2, 1>, scalar_prefetch = 0 : i64, scratch_operands = 1 : i64, tpu.core_type = #tpu.core_type<tc>, window_params = [{transform_indices = @transform_0, window_bounds = array<i64: 8, 128>}, {transform_indices = @transform_1, window_bounds = array<i64: 1, 128, 256>}, {transform_indices = @transform_2, window_bounds = array<i64: 1, 1, 256>}, {transform_indices = @transform_3, window_bounds = array<i64: 1, 1, 256>}, {transform_indices = @transform_4, window_bounds = array<i64: 1, 1, 256>}, {transform_indices = @transform_5, window_bounds = array<i64: 1, 8, 256>}]} {
    %c0_i32 = arith.constant 0 : i32
    %0 = arith.cmpi eq, %arg2, %c0_i32 : i32
    %1 = arith.extui %0 : i1 to i32
    %c0_i32_0 = arith.constant 0 : i32
    %2 = arith.cmpi ne, %1, %c0_i32_0 : i32
    scf.if %2 {
      %cst_11 = arith.constant 0.000000e+00 : f32
      %14 = vector.broadcast %cst_11 : f32 to vector<8x256xf32>
      %c0_12 = arith.constant 0 : index
      %c0_13 = arith.constant 0 : index
      %15 = vector.load %arg9[%c0_12, %c0_13] : memref<8x256xf32, #tpu.memory_space<vmem>>, vector<8x256xf32>
      tpu.vector_store %arg9[%c0_12, %c0_13], %14 {strides = array<i32>} : memref<8x256xf32, #tpu.memory_space<vmem>>, vector<8x256xf32>,
    } else {
    }
    %c0 = arith.constant 0 : index
    %c0_1 = arith.constant 0 : index
    %3 = vector.load %arg9[%c0, %c0_1] : memref<8x256xf32, #tpu.memory_space<vmem>>, vector<8x256xf32>
    %c0_2 = arith.constant 0 : index
    %c0_3 = arith.constant 0 : index
    %4 = vector.load %arg3[%c0_2, %c0_3] : memref<8x128xf32, #tpu.memory_space<vmem>>, vector<8x128xf32>
    %5 = arith.truncf %4 : vector<8x128xf32> to vector<8x128xbf16>
    %c0_4 = arith.constant 0 : index
    %c0_5 = arith.constant 0 : index
    %c0_6 = arith.constant 0 : index
    %6 = vector.load %arg4[%c0_4, %c0_5, %c0_6] : memref<1x128x256xbf16, #tpu.memory_space<vmem>>, vector<1x128x256xbf16>
    %7 = vector.shape_cast %6 : vector<1x128x256xbf16> to vector<128x256xbf16>
    %cst = arith.constant dense<0.000000e+00> : vector<8x256xf32>
    %8 = tpu.matmul %5, %7, %cst {dimension_numbers = #tpu.dot_dimension_numbers<[1], [0], [0], [1], [0, 0, 1, 1], [], []>} : vector<8x128xbf16>, vector<128x256xbf16>, vector<8x256xf32> -> vector<8x256xf32>
    %9 = arith.addf %3, %8 : vector<8x256xf32>
    %c0_7 = arith.constant 0 : index
    %c0_8 = arith.constant 0 : index
    %10 = vector.load %arg9[%c0_7, %c0_8] : memref<8x256xf32, #tpu.memory_space<vmem>>, vector<8x256xf32>
    tpu.vector_store %arg9[%c0_7, %c0_8], %9 {strides = array<i32>} : memref<8x256xf32, #tpu.memory_space<vmem>>, vector<8x256xf32>,
    %c0_i32_9 = arith.constant 0 : i32
    %11 = arith.cmpi eq, %arg2, %c0_i32_9 : i32
    %12 = arith.extui %11 : i1 to i32
    %c0_i32_10 = arith.constant 0 : i32
    %13 = arith.cmpi ne, %12, %c0_i32_10 : i32
    scf.if %13 {
      %c0_11 = arith.constant 0 : index
      %c0_12 = arith.constant 0 : index
      %14 = vector.load %arg9[%c0_11, %c0_12] : memref<8x256xf32, #tpu.memory_space<vmem>>, vector<8x256xf32>
      %c0_13 = arith.constant 0 : index
      %c0_14 = arith.constant 0 : index
      %c0_15 = arith.constant 0 : index
      %15 = vector.load %arg5[%c0_13, %c0_14, %c0_15] : memref<1x1x256xf32, #tpu.memory_space<vmem>>, vector<1x1x256xf32>
      %16 = vector.shape_cast %15 : vector<1x1x256xf32> to vector<1x256xf32>
      %17 = vector.broadcast %16 : vector<1x256xf32> to vector<8x256xf32>
      %18 = arith.addf %14, %17 : vector<8x256xf32>
      %c0_16 = arith.constant 0 : index
      %c0_17 = arith.constant 0 : index
      %c0_18 = arith.constant 0 : index
      %19 = vector.load %arg6[%c0_16, %c0_17, %c0_18] : memref<1x1x256xf32, #tpu.memory_space<vmem>>, vector<1x1x256xf32>
      %20 = vector.shape_cast %19 : vector<1x1x256xf32> to vector<1x256xf32>
      %c0_19 = arith.constant 0 : index
      %c0_20 = arith.constant 0 : index
      %c0_21 = arith.constant 0 : index
      %21 = vector.load %arg7[%c0_19, %c0_20, %c0_21] : memref<1x1x256xf32, #tpu.memory_space<vmem>>, vector<1x1x256xf32>
      %22 = vector.shape_cast %21 : vector<1x1x256xf32> to vector<1x256xf32>
      %cst_22 = arith.constant dense<0.000000e+00> : vector<8xf32>
      %23 = vector.multi_reduction <add>, %18, %cst_22 [1] : vector<8x256xf32> to vector<8xf32>
      %24 = vector.shape_cast %23 : vector<8xf32> to vector<8x1xf32>
      %cst_23 = arith.constant 2.560000e+02 : f32
      %25 = vector.broadcast %cst_23 : f32 to vector<8x1xf32>
      %26 = arith.divf %24, %25 : vector<8x1xf32>
      %27 = vector.broadcast %26 : vector<8x1xf32> to vector<8x256xf32>
      %28 = arith.subf %18, %27 : vector<8x256xf32>
      %29 = arith.mulf %28, %28 : vector<8x256xf32>
      %cst_24 = arith.constant dense<0.000000e+00> : vector<8xf32>
      %30 = vector.multi_reduction <add>, %29, %cst_24 [1] : vector<8x256xf32> to vector<8xf32>
      %31 = vector.shape_cast %30 : vector<8xf32> to vector<8x1xf32>
      %cst_25 = arith.constant 2.560000e+02 : f32
      %32 = vector.broadcast %cst_25 : f32 to vector<8x1xf32>
      %33 = arith.divf %31, %32 : vector<8x1xf32>
      %34 = vector.broadcast %26 : vector<8x1xf32> to vector<8x256xf32>
      %35 = arith.subf %18, %34 : vector<8x256xf32>
      %cst_26 = arith.constant 9.99999974E-6 : f32
      %36 = vector.broadcast %cst_26 : f32 to vector<8x1xf32>
      %37 = arith.addf %33, %36 : vector<8x1xf32>
      %38 = math.rsqrt %37 : vector<8x1xf32>
      %39 = vector.broadcast %38 : vector<8x1xf32> to vector<8x256xf32>
      %40 = arith.mulf %35, %39 : vector<8x256xf32>
      %41 = vector.broadcast %20 : vector<1x256xf32> to vector<8x256xf32>
      %42 = arith.mulf %40, %41 : vector<8x256xf32>
      %43 = vector.broadcast %22 : vector<1x256xf32> to vector<8x256xf32>
      %44 = arith.addf %42, %43 : vector<8x256xf32>
      %cst_27 = arith.constant 5.000000e-01 : f32
      %45 = vector.broadcast %cst_27 : f32 to vector<8x256xf32>
      %46 = arith.mulf %45, %44 : vector<8x256xf32>
      %cst_28 = arith.constant 4.471500e-02 : f32
      %47 = vector.broadcast %cst_28 : f32 to vector<8x256xf32>
      %48 = arith.mulf %47, %44 : vector<8x256xf32>
      %49 = arith.mulf %48, %44 : vector<8x256xf32>
      %50 = arith.mulf %49, %44 : vector<8x256xf32>
      %51 = arith.addf %44, %50 : vector<8x256xf32>
      %cst_29 = arith.constant 0.797884583 : f32
      %52 = vector.broadcast %cst_29 : f32 to vector<8x256xf32>
      %53 = arith.mulf %52, %51 : vector<8x256xf32>
      %54 = math.tanh %53 : vector<8x256xf32>
      %cst_30 = arith.constant 1.000000e+00 : f32
      %55 = vector.broadcast %cst_30 : f32 to vector<8x256xf32>
      %56 = arith.addf %55, %54 : vector<8x256xf32>
      %57 = arith.mulf %46, %56 : vector<8x256xf32>
      %c0_31 = arith.constant 0 : index
      %c0_32 = arith.constant 0 : index
      %c0_33 = arith.constant 0 : index
      %58 = vector.load %arg8[%c0_31, %c0_32, %c0_33] : memref<1x8x256xf32, #tpu.memory_space<vmem>>, vector<1x8x256xf32>
      %59 = vector.shape_cast %58 : vector<1x8x256xf32> to vector<8x256xf32>
      %60 = vector.shape_cast %57 : vector<8x256xf32> to vector<1x8x256xf32>
      tpu.vector_store %arg8[%c0_31, %c0_32, %c0_33], %60 {strides = array<i32>} : memref<1x8x256xf32, #tpu.memory_space<vmem>>, vector<1x8x256xf32>,
    } else {
    }
    return
  }
  func.func @transform_0(%arg0: i32, %arg1: i32, %arg2: i32) -> (i32, i32) {
    %c0_i32 = arith.constant 0 : i32
    return %arg1, %arg2 : i32, i32
  }
  func.func @transform_1(%arg0: i32, %arg1: i32, %arg2: i32) -> (i32, i32, i32) {
    %c0_i32 = arith.constant 0 : i32
    %c0_i32_0 = arith.constant 0 : i32
    return %arg0, %arg2, %c0_i32 : i32, i32, i32
  }
  func.func @transform_2(%arg0: i32, %arg1: i32, %arg2: i32) -> (i32, i32, i32) {
    %c0_i32 = arith.constant 0 : i32
    %c0_i32_0 = arith.constant 0 : i32
    %c0_i32_1 = arith.constant 0 : i32
    return %arg0, %c0_i32, %c0_i32_0 : i32, i32, i32
  }
  func.func @transform_3(%arg0: i32, %arg1: i32, %arg2: i32) -> (i32, i32, i32) {
    %c0_i32 = arith.constant 0 : i32
    %c0_i32_0 = arith.constant 0 : i32
    %c0_i32_1 = arith.constant 0 : i32
    return %arg0, %c0_i32, %c0_i32_0 : i32, i32, i32
  }
  func.func @transform_4(%arg0: i32, %arg1: i32, %arg2: i32) -> (i32, i32, i32) {
    %c0_i32 = arith.constant 0 : i32
    %c0_i32_0 = arith.constant 0 : i32
    %c0_i32_1 = arith.constant 0 : i32
    return %arg0, %c0_i32, %c0_i32_0 : i32, i32, i32
  }
  func.func @transform_5(%arg0: i32, %arg1: i32, %arg2: i32) -> (i32, i32, i32) {
    %c0_i32 = arith.constant 0 : i32
    %c0_i32_0 = arith.constant 0 : i32
    return %arg0, %arg1, %c0_i32 : i32, i32, i32
  }
}

</mosaic_0001>

<bundles_post_ra>
// kernel: tpu_custom_call.1
= control target key start
LH: loop header
LB: loop body
LE: loop exit
PB: predicated region body
PF: predicated region fallthrough
CT: control target
= control target key end

     0   :  { %s1781_s0 = inlined_call_operand.hbm [shape: f32[16,128], index: 0, kind: input, shape index: {}]   ;;  %s1782_s1 = inlined_call_operand.hbm [shape: bf16[4,128,256], index: 1, kind: input, shape index: {}]   ;;  %s1783_s2 = inlined_call_operand.hbm [shape: f32[4,1,256], index: 2, kind: input, shape index: {}]   ;;  %s1784_s3 = inlined_call_operand.hbm [shape: f32[4,1,256], index: 3, kind: input, shape index: {}]   ;;  %s1785_s4 = inlined_call_operand.hbm [shape: f32[4,1,256], index: 4, kind: input, shape index: {}]   ;;  %s1786_s5 = inlined_call_operand.hbm [shape: f32[4,16,256], index: 5, kind: output, shape index: {}]  }
   0x1   :  { %1799 = sst [smem:[#allocation32_spill]] %s1781_s0 }
   0x2   :  { %1800 = sst [smem:[#allocation33_spill]] %s1782_s1 }
   0x3   :  { %1801 = sst [smem:[#allocation34_spill]] %s1784_s3 }
   0x4   :  { %1802 = sst [smem:[#allocation35_spill]] %s1785_s4 }
   0x5   :  { %1803 = sst [smem:[#allocation36_spill]] %s1786_s5 }
   0x6   :  { %10 = vsyncpa [#allocation4], 0 }
   0x7   :  { %12 = vsyncpa [#allocation4 + $0x1], 0 }
   0x8   :  { %13 = vsyncpa [#allocation7], 0 }
   0x9   :  { %15 = vsyncpa [#allocation7 + $0x1], 0 }
   0xa   :  { %16 = vsyncpa [#allocation10], 0 }
   0xb   :  { %18 = vsyncpa [#allocation10 + $0x1], 0 }
   0xc   :  { %19 = vsyncpa [#allocation5], 0 }
   0xd   :  { %21 = vsyncpa [#allocation5 + $0x1], 0  ;;  %s1443_s18 = smov 0   ;;  %s1445_s19 = smov 0  }
   0xe   :  { %s1447_s20 = smov 0   ;;  %s1449_s21 = smov 0  }
   0xf   :  { %s1451_s22 = smov 0   ;;  %s1453_s23 = smov 0  }
  0x10   :  { %s1455_s24 = smov 0   ;;  %s1457_s25 = smov 0  }
  0x11   :  { %s1459_s26 = smov 0   ;;  %s1461_s27 = smov 0  }
  0x12   :  { %s1463_s28 = smov 0   ;;  %s1465_s29 = smov 0  }
  0x13   :  { %s1467_s30 = smov 0   ;;  %s1469_s6 = smov 0  }
  0x14 LB: > { %1804 = sst [smem:[#allocation17_spill]] %s1364_s20  ;;  %p63_p0 = scmp.eq.s32.totalorder %s1408_s6, 0  ;;  %s1408_s6 = sphi %s1469_s6, %s27_s6   ;;  %s1404_s30 = sphi %s1467_s30, %s1857_s30   ;;  %s1400_s29 = sphi %s1465_s29, %s1849_s29   ;;  %s1396_s28 = sphi %s1463_s28, %s1856_s28   ;;  %s1392_s27 = sphi %s1461_s27, %s1847_s27   ;;  %s1388_s26 = sphi %s1459_s26, %s1846_s26   ;;  %s1384_s25 = sphi %s1457_s25, %s1845_s25   ;;  %s1380_s24 = sphi %s1455_s24, %s1844_s24   ;;  %s1376_s23 = sphi %s1453_s23, %s1843_s23   ;;  %s1372_s22 = sphi %s1451_s22, %s1855_s22   ;;  %s1368_s21 = sphi %s1449_s21, %s1854_s21   ;;  %s1364_s20 = sphi %s1447_s20, %s1841_s20   ;;  %s1360_s19 = sphi %s1445_s19, %s1853_s19   ;;  %s1356_s18 = sphi %s1443_s18, %s1852_s18  }
  0x15   : > { %1805 = sst [smem:[#allocation18_spill]] %s1376_s23  ;;  %p90_p1 = scmp.ne.s32.totalorder %s1376_s23, %s1372_s22 }
  0x16   : > { %1806 = sst [smem:[#allocation19_spill]] %s1384_s25  ;;  %p96_p2 = scmp.ne.s32.totalorder %s1372_s22, %s1368_s21 }
  0x17   : > { %1807 = sst [smem:[#allocation20_spill]] %s1388_s26  ;;  %p1791_p3 = scmp.lt.s32.totalorder %s1408_s6, 8 }
  0x18   : > { %1808 = sst [smem:[#allocation21_spill]] %s1392_s27  ;;  %p92_p4 = por %p90_p1, %p63_p0 }
  0x19   : > { %1809 = sst [smem:[#allocation22_spill]] %s1396_s28  ;;  %s246_s8 = sand.u32 1, %s1408_s6  }
  0x1a   : > { %1810 = sst [smem:[#allocation23_spill]] %s1400_s29  ;;  %s248_s9 = sand.u32 1, %s1376_s23  }
  0x1b   : > { %1811 = sst [smem:[#allocation24_spill]] %s1404_s30  ;;  %s844_s10 = sshll.u32 %s248_s9, 7 }
  0x1c   : > { %s930_s11 = sshll.u32 %s1404_s30, 7  ;;  %s1812_s1 = sld [smem:[#allocation33_spill]] }
  0x1d   : > { %s250_s16 = scalar_lea.vmem [#allocation6], %s844_s10  ;;  %p1530_p5 = pnand %p1791_p3, %p92_p4 }
  0x1e   : > { %s261_s17 = sshll.u32 %s250_s16, 4  ;;  %p853_p6 = scmp.ge.s32.totalorder %s1408_s6, 1  ;;  %s262_s17 = int_to_ptr.vmem [resolvable:$true] %s261_s17 }
  0x1f   : > { %p326_p7 = scmp.lt.s32.totalorder %s1408_s6, 9  ;;  %s1536_s5 = scalar_lea.sflag [#allocation7], %s246_s8 }
  0x20   : > { %s1411_s10 = smov 8   ;;  %s1545_s13 = sshll.u32 %s248_s9, 1 }
  0x21   : > { %p1541_p8 = pnand %p853_p6, %p326_p7  ;;  %s1816_s3 = sld [smem:[#allocation34_spill]] }
  0x22   : > { %s258_s14 = scalar_lea.hbm %s1812_s1, %s930_s11  ;;  %s1410_s11 = smov 128  }
  0x23   : > { %s259_s15 = sshll.u32 %s258_s14, 4  ;;  %s1548_s14 = sshll.u32 %s1404_s30, 1  ;;  %s260_s15 = int_to_ptr.hbm [resolvable:$true] %s259_s15 }
  0x24   : > { %965 = dma.hbm_to_vmem [thread:$0]  (!%p1530_p5), %s260_s15, 2048, %s262_s17, %s1536_s5, %s1410_s11, %s1410_s11, %s1411_s10  }
  0x25   : > { %s1814_s12 = scalar_select %p1541_p8, 1, 0 }
  0x26   : > { %s294_s17 = scalar_lea.vmem [#allocation9], %s1545_s13  ;;  %s1555_s9 = scalar_lea.sflag [#allocation10], %s246_s8 }
  0x27   : > { %1815 = sst [smem:[#allocation25_spill]] %s1814_s12  ;;  %s298_s28 = scalar_lea.hbm %s1816_s3, %s1548_s14 }
  0x28   : > { %s300_s15 = sshll.u32 %s298_s28, 4  ;;  %s302_s11 = sshll.u32 %s294_s17, 4  ;;  %s301_s15 = int_to_ptr.hbm [resolvable:$true] %s300_s15  ;;  %s303_s11 = int_to_ptr.vmem [resolvable:$true] %s302_s11 }
  0x29   : > { %971 = dma.hbm_to_vmem [thread:$0]  (!%p1530_p5), %s301_s15, 32, %s303_s11, %s1555_s9  }
  0x2a   : > { %s1561_s10 = sadd.s32 4294967295, %s1408_s6   ;;  %s839_s1 = sadd.s32 4294967294, %s1408_s6  }
  0x2b   : > { %s42_s16 = sadd.s32 1, %s1400_s29  ;;  %s46_s28 = sadd.s32 1, %s1404_s30 }
  0x2c   : > { %p44_p9 = scmp.ge.s32.totalorder %s42_s16, 2  ;;  %s55_s3 = sadd.s32 1, %s1388_s26 }
  0x2d   : > { %p62_p10 = scmp.ne.s32.totalorder %s1388_s26, %s1384_s25  ;;  %p68_p11 = scmp.ne.s32.totalorder %s1384_s25, %s1380_s24 }
  0x2e   : > { %s1859_s16 = smov (%p44_p9, %s42_s16), 0  ;;  %s1861_s28 = smov (!%p44_p9, %s46_s28), %s1404_s30 }
  0x2f   : > { %1817 = sst [smem:[#allocation26_spill]] %s1859_s16  ;;  %s50_s8 = ssub.s32 %s1400_s29, %s1859_s16 }
  0x30   : > { %p1578_p12 = por %p63_p0, %p62_p10  ;;  %p48_p13 = scmp.ge.s32.totalorder %s1861_s28, 4 }
  0x31   : > { %p53_p1 = scmp.eq.s32.totalorder %s50_s8, 0  ;;  %p69_p4 = scmp.eq.s32.totalorder %s1561_s10, 0 }
  0x32   : > { %s189_s24 = sadd.s32 1, %s1364_s20  ;;  %s1863_s28 = smov (%p48_p13, %s1861_s28), 0 }
  0x33   : > { %1819 = sst [smem:[#allocation27_spill]] %s1863_s28  ;;  %p1589_p6 = por %p69_p4, %p68_p11 }
  0x34   : > { %s1587_s17 = scalar_select %p53_p1, %s1388_s26, %s55_s3  }
  0x35   : > { %s78_s16 = ssub.s32 %s1404_s30, %s1863_s28  ;;  %p1598_p7 = por %p96_p2, %p69_p4 }
  0x36   : > { %1820 = sst [smem:[#allocation28_spill]] %s1587_s17  ;;  %p81_p0 = scmp.eq.s32.totalorder %s78_s16, 0 }
  0x37   : > { %s186_s25 = sor.u32 %s78_s16, %s50_s8  ;;  %p199_p9 = scmp.ne.s32.totalorder %s1364_s20, %s1360_s19 }
  0x38   : > { %s1823_s12 = sadd.s32 1, %s1376_s23  ;;  %p187_p10 = scmp.eq.s32.totalorder %s186_s25, 0 }
  0x39   : > { %s1607_s4 = scalar_select %p81_p0, %s1376_s23, %s1823_s12  }
  0x3a   : > { %p200_p13 = scmp.eq.s32.totalorder %s1561_s10, 7  ;;  %p205_p11 = scmp.ne.s32.totalorder %s1360_s19, %s1356_s18 }
  0x3b   : > { %1824 = sst [smem:[#allocation29_spill]] %s1607_s4  ;;  %p206_p1 = scmp.eq.s32.totalorder %s839_s1, 7 }
  0x3c   : > { %s1613_s3 = scalar_select %p187_p10, %s1364_s20, %s189_s24  }
  0x3d   : > { %p1615_p3 = por %p200_p13, %p199_p9  ;;  %p1619_p2 = por %p206_p1, %p205_p11 }
  0x3e   : > { %1825 = sst [smem:[#allocation30_spill]] %s1613_s3  ;;  %s226_s12 = sand.u32 1, %s1388_s26  }
  0x3f   : > { %s1827_s16 = scalar_select %p1619_p2, 1, 0 }
  0x40   : > { %s843_s8 = sshll.u32 %s1400_s29, 3  ;;  %s842_s25 = sshll.u32 %s226_s12, 3 }
  0x41   : > { %1828 = sst [smem:[#allocation31_spill]] %s1827_s16  ;;  %s230_s24 = scalar_lea.vmem [#allocation3], %s842_s25 }
  0x42   : > { %s1829_s0 = sld [smem:[#allocation32_spill]]  ;;  %s239_s4 = sshll.u32 %s230_s24, 4  ;;  %s240_s4 = int_to_ptr.vmem [resolvable:$true] %s239_s4 }
  0x43   : > { %p1830_p4 = scmp.lt.s32.totalorder %s1408_s6, 8  ;;  %s279_s29 = scalar_lea.hbm %s1783_s2, %s1548_s14 }
  0x44   : > { %s275_s30 = scalar_lea.vmem [#allocation8], %s1545_s13  ;;  %s281_s3 = sshll.u32 %s279_s29, 4  ;;  %s282_s3 = int_to_ptr.hbm [resolvable:$true] %s281_s3 }
  0x45   : > { %p960_p0 = pnand %p1830_p4, %p1578_p12  ;;  %s283_s28 = sshll.u32 %s275_s30, 4  ;;  %s284_s28 = int_to_ptr.vmem [resolvable:$true] %s283_s28 }
  0x46   : > { %968 = dma.hbm_to_vmem [thread:$0]  (!%p1530_p5), %s282_s3, 32, %s284_s28, %s1536_s5  }
  0x47   : > { %s1831_s15 = sld [smem:[#allocation35_spill]]  ;;  %s313_s20 = scalar_lea.vmem [#allocation11], %s1545_s13 }
  0x48   : > { %s235_s17 = scalar_lea.hbm %s1829_s0, %s843_s8  ;;  %s227_s8 = scalar_lea.sflag [#allocation4], %s226_s12 }
  0x49   : > { %s237_s1 = sshll.u32 %s235_s17, 4  ;;  %s321_s16 = sshll.u32 %s313_s20, 4  ;;  %s238_s1 = int_to_ptr.hbm [resolvable:$true] %s237_s1  ;;  %s322_s16 = int_to_ptr.vmem [resolvable:$true] %s321_s16 }
  0x4a   : > { %962 = dma.hbm_to_vmem [thread:$0]  (!%p960_p0), %s238_s1, 128, %s240_s4, %s227_s8  }
  0x4b   : > { %330 = sbr.rel (%p1541_p8) target bundleno = 550 (0x226), region = 40  ;;  %s1833_s26 = sld [smem:[#allocation19_spill]] (!%p1541_p8) }
  0x4d   : > { %s317_s24 = scalar_lea.hbm %s1831_s15, %s1548_s14 }
  0x4e   : > { %s319_s0 = sshll.u32 %s317_s24, 4  ;;  %s320_s0 = int_to_ptr.hbm [resolvable:$true] %s319_s0 }
  0x4f   : > { %974 = dma.hbm_to_vmem [thread:$0]  (!%p1530_p5), %s320_s0, 32, %s322_s16, %s1555_s9  }
  0x51   : > { %s332_s4 = sand.u32 1, %s1833_s26  }
  0x52   : > { %s1651_s29 = sshll.u32 %s332_s4, 3  ;;  %s333_s5 = scalar_lea.sflag [#allocation4], %s332_s4 }
  0x53   : > { %s336_s3 = scalar_lea.vmem [#allocation3], %s1651_s29 }
  0x54   : > { %1339 = dma.done.wait (%p1589_p6), %s333_s5, 128  }
  0x55   : > { %1341 = vsyncadd (%p1589_p6), %s333_s5, 4294967168  ;;  %s342_s0 = sand.u32 1, %s1561_s10   ;;  %s344_s20 = sand.u32 1, %s1372_s22  }
  0x56   : > { %s855_s7 = sshll.u32 %s344_s20, 7  ;;  %s343_s13 = scalar_lea.sflag [#allocation7], %s342_s0 }
  0x57   : > { %s1660_s14 = scalar_lea.vmem [#allocation6], %s855_s7 }
  0x58   : > { %1343 = dma.done.wait (%p1598_p7), %s343_s13, 2080  }
  0x59   : > { %1345 = vsyncadd (%p1598_p7), %s343_s13, 4294965216  ;;  %s1666_s9 = sshll.u32 %s344_s20, 1  ;;  %s363_s16 = scalar_lea.sflag [#allocation10], %s342_s0 }
  0x5a   : > { %s356_s11 = scalar_lea.vmem [#allocation8], %s1666_s9  ;;  %s366_s12 = scalar_lea.vmem [#allocation9], %s1666_s9 }
  0x5b   : > { %1347 = dma.done.wait (%p1598_p7), %s363_s16, 64  }
  0x5c   : > { %1349 = vsyncadd (%p1598_p7), %s363_s16, 4294967232  ;;  %v918_v0 = vld [vmem:[%s1660_s14 + $0x70] sm:$0xf]  ;;  %v946_v1 = vld [vmem:[%s1660_s14 + $0x74] sm:$0xf0]  ;;  %v1412_v60 = vmov 256.0  }
  0x5d   : > { %v945_v2 = vld [vmem:[%s1660_s14 + $0x74] sm:$0xf]  ;;  %v919_v3 = vor.u32 %v946_v1, %v918_v0  ;;  %v920_v4 = vld [vmem:[%s1660_s14 + $0x78] sm:$0xf0]  ;;  %v910_v5 = vld [vmem:[%s1660_s14 + $0x60] sm:$0xf]  ;;  %1096 = vrcp.f32 %v1412_v60 }
  0x5e   : > { %v944_v6 = vld [vmem:[%s1660_s14 + $0x64] sm:$0xf0]  ;;  %v923_v7 = vor.u32 %v945_v2, %v920_v4  ;;  %v943_v8 = vld [vmem:[%s1660_s14 + $0x64] sm:$0xf]  ;;  %v912_v9 = vld [vmem:[%s1660_s14 + $0x68] sm:$0xf0] }
  0x5f   : > { %531 = vmatpush.bf16.msra.mxu0 %v919_v3  ;;  %v911_v10 = vor.u32 %v944_v6, %v910_v5  ;;  %v915_v11 = vor.u32 %v943_v8, %v912_v9  ;;  %v902_v12 = vld [vmem:[%s1660_s14 + $0x50] sm:$0xf]  ;;  %v942_v13 = vld [vmem:[%s1660_s14 + $0x54] sm:$0xf0]  ;;  %v941_v14 = vld [vmem:[%s1660_s14 + $0x54] sm:$0xf] }
  0x60   : > { %544 = vmatpush.bf16.msra.mxu1 %v923_v7  ;;  %v904_v15 = vld [vmem:[%s1660_s14 + $0x58] sm:$0xf0]  ;;  %v903_v16 = vor.u32 %v942_v13, %v902_v12  ;;  %v894_v18 = vld [vmem:[%s1660_s14 + $0x40] sm:$0xf]  ;;  %v940_v19 = vld [vmem:[%s1660_s14 + $0x44] sm:$0xf0] }
  0x61   : > { %v907_v17 = vor.u32 %v941_v14, %v904_v15  ;;  %v939_v20 = vld [vmem:[%s1660_s14 + $0x44] sm:$0xf]  ;;  %v896_v21 = vld [vmem:[%s1660_s14 + $0x48] sm:$0xf0]  ;;  %v895_v22 = vor.u32 %v940_v19, %v894_v18  ;;  %v886_v24 = vld [vmem:[%s1660_s14 + $0x30] sm:$0xf] }
  0x62   : > { %v899_v23 = vor.u32 %v939_v20, %v896_v21  ;;  %v938_v25 = vld [vmem:[%s1660_s14 + $0x34] sm:$0xf0]  ;;  %v937_v26 = vld [vmem:[%s1660_s14 + $0x34] sm:$0xf]  ;;  %v888_v27 = vld [vmem:[%s1660_s14 + $0x38] sm:$0xf0] }
  0x63   : > { %532 = vmatpush.bf16.msra.mxu0 %v911_v10  ;;  %v887_v28 = vor.u32 %v938_v25, %v886_v24  ;;  %v891_v29 = vor.u32 %v937_v26, %v888_v27  ;;  %v878_v30 = vld [vmem:[%s1660_s14 + $0x20] sm:$0xf]  ;;  %v936_v31 = vld [vmem:[%s1660_s14 + $0x24] sm:$0xf0]  ;;  %v935_v32 = vld [vmem:[%s1660_s14 + $0x24] sm:$0xf]  ;;  %v1097_v61 = vpop.eup %1096 }
  0x64   : > { %545 = vmatpush.bf16.msra.mxu1 %v915_v11  ;;  %v880_v33 = vld [vmem:[%s1660_s14 + $0x28] sm:$0xf0]  ;;  %v879_v34 = vor.u32 %v936_v31, %v878_v30  ;;  %v870_v36 = vld [vmem:[%s1660_s14 + $0x10] sm:$0xf]  ;;  %v934_v37 = vld [vmem:[%s1660_s14 + $0x14] sm:$0xf0]  ;;  %vm584_vm0 = vweird.f32 %v1097_v61 }
  0x65   : > { %v883_v35 = vor.u32 %v935_v32, %v880_v33  ;;  %v933_v38 = vld [vmem:[%s1660_s14 + $0x14] sm:$0xf]  ;;  %v872_v39 = vld [vmem:[%s1660_s14 + $0x18] sm:$0xf0]  ;;  %v871_v40 = vor.u32 %v934_v37, %v870_v36  ;;  %v862_v42 = vld [vmem:[%s1660_s14] sm:$0xf] }
  0x66   : > { %v875_v41 = vor.u32 %v933_v38, %v872_v39  ;;  %v932_v43 = vld [vmem:[%s1660_s14 + $0x4] sm:$0xf0]  ;;  %v931_v44 = vld [vmem:[%s1660_s14 + $0x4] sm:$0xf]  ;;  %v864_v45 = vld [vmem:[%s1660_s14 + $0x8] sm:$0xf0] }
  0x67   : > { %533 = vmatpush.bf16.msra.mxu0 %v903_v16  ;;  %v863_v46 = vor.u32 %v932_v43, %v862_v42  ;;  %v433_v47 = vld [vmem:[%s336_s3] sm:$0xff]  ;;  %v867_v48 = vor.u32 %v931_v44, %v864_v45  ;;  %v566_v50 = vld [vmem:[%s356_s11] sm:$0x3]  ;;  %v580_v62 = vmul.f32 256.0, %v1097_v61  ;;  %s376_s27 = scalar_lea.vmem [#allocation11], %s1666_s9  ;;  %s1834_s10 = sld [smem:[#allocation21_spill]] }
  0x68   : > { %546 = vmatpush.bf16.msra.mxu1 %v907_v17  ;;  %v434_v49 = vpack.c.bf16 %v433_v47, %v433_v47  ;;  %v568_v51 = vperm.slane %v566_v50, 0  ;;  %v569_v52 = vperm.slane %v566_v50, 1  ;;  %v574_v17 = vld [vmem:[%s366_s12] sm:$0x3]  ;;  %v575_v19 = vld [vmem:[%s376_s27] sm:$0x3] }
  0x69   : > { %v581_v63 = vsub.f32 1.0, %v580_v62  ;;  %v609_v21 = vperm.slane %v574_v17, 0  ;;  %s1835_s1 = sld [smem:[#allocation22_spill]]  ;;  %v616_v24 = vperm.slane %v575_v19, 0  ;;  %v617_v25 = vperm.slane %v575_v19, 1  ;;  %s421_s8 = sand.u32 1, %s1360_s19  }
  0x6a   : > { %s859_s25 = sshll.u32 %s421_s8, 4  ;;  %s1836_s26 = sld [smem:[#allocation36_spill]] }
  0x6b   : > { %534 = vmatpush.bf16.msra.mxu0 %v895_v22  ;;  %v582_v0 = vmul.f32 %v1097_v61, %v581_v63  ;;  %v610_v22 = vperm.slane %v574_v17, 1  ;;  %s423_s5 = scalar_lea.vmem [#allocation12], %s859_s25  ;;  %s643_s20 = scalar_lea.sflag [#allocation5], %s421_s8 }
  0x6c   : > { %547 = vmatpush.bf16.msra.mxu1 %v899_v23  ;;  %s658_s3 = sshll.u32 %s423_s5, 4  ;;  %s659_s3 = int_to_ptr.vmem [resolvable:$true] %s658_s3 }
  0x6d   : > { %v583_v1 = vadd.f32 %v1097_v61, %v582_v0  ;;  %s925_s30 = sshll.u32 %s1834_s10, 1 }
  0x6f   : > { %535 = vmatpush.bf16.msra.mxu0 %v887_v28  ;;  %v585_v2 = vsel %vm584_vm0, %v1097_v61, %v583_v1  ;;  %s926_s28 = sshll.u32 %s1835_s1, 2 }
  0x70   : > { %548 = vmatpush.bf16.msra.mxu1 %v891_v29  ;;  %s654_s17 = sadd.s32 %s926_s28, %s925_s30  ;;  %s1837_s4 = smov %s1836_s26 }
  0x71   : > { %s927_s15 = sshll.u32 %s654_s17, 3  ;;  %s1274_s11 = scalar_lea.hbm %s1837_s4, 128 }
  0x72   : > { %s656_s29 = scalar_lea.hbm %s1836_s26, %s927_s15 }
  0x73   : > { %536 = vmatpush.bf16.msra.mxu0 %v879_v34  ;;  %s660_s0 = sshll.u32 %s656_s29, 4  ;;  %s661_s0 = int_to_ptr.hbm [resolvable:$true] %s660_s0 }
  0x74   : > { %549 = vmatpush.bf16.msra.mxu1 %v883_v35  ;;  %s1268_s7 = sshra.s32 %s661_s0, 4  ;;  %s1269_s7 = int_to_ptr.hbm [resolvable:$true] %s1268_s7 }
  0x75   : > { %s1270_s13 = scalar_lea.hbm %s1269_s7, 16  ;;  %p1275_p6 = scmp.lt.s32.totalorder %s1269_s7, %s1837_s4 }
  0x76   : > { %p1271_p5 = scmp.ne.s32.totalorder %s1269_s7, %s1270_s13  ;;  %p1276_p7 = scmp.lt.s32.totalorder %s1274_s11, %s1270_s13 }
  0x77   : > { %537 = vmatpush.bf16.msra.mxu0 %v871_v40 }
  0x78   : > { %550 = vmatpush.bf16.msra.mxu1 %v875_v41  ;;  %p1272_p8 = pnand %p1271_p5, %p1615_p3  ;;  %p1277_p9 = por %p1276_p7, %p1275_p6 }
  0x7a   : > { %p1273_p12 = pneg %p1272_p8 }
  0x7b   : > { %538 = vmatpush.bf16.msra.mxu0 %v863_v46 }
  0x7c   : > { %551 = vmatpush.bf16.msra.mxu1 %v867_v48  ;;  %p1278_p10 = pnand %p1277_p9, %p1273_p12 }
  0x7e   : > { %539 = vmatmul.bf16.vlgmr.msra.gmra.mxu0 %v434_v49 }
  0x7f   : > { %552 = vmatmul.bf16.vlgmr.msra.gmra.mxu1 %v434_v49 }
  0xfb   : > { %v540_v53 = vpop.f32.mrf.mxu0 }
  0xfc   : > { %v572_v54 = vadd.f32 %v568_v51, %v540_v53  ;;  %v553_v55 = vpop.f32.mrf.mxu1 }
  0xfd   : > { %v573_v56 = vadd.f32 %v569_v52, %v553_v55 }
  0xff   : > { %v576_v57 = vadd.f32 %v573_v56, %v572_v54 }
 0x101   : > { %577 = vadd.xlane.f32.xlu0 %v576_v57 }
 0x103   : > { %v542_v58 = vpop.f32.mrf.mxu0 }
 0x104   : > { %v555_v59 = vpop.f32.mrf.mxu1 }
 0x174   : > { %v578_v3 = vpop.xlane.xlu0 %577 }
 0x175   : > { %v586_v4 = vmul.f32 %v585_v2, %v578_v3 }
 0x177   : > { %v587_v5 = vsub.f32 %v572_v54, %v586_v4  ;;  %v588_v6 = vsub.f32 %v573_v56, %v586_v4 }
 0x179   : > { %v589_v7 = vmul.f32 %v587_v5, %v587_v5  ;;  %v590_v8 = vmul.f32 %v588_v6, %v588_v6 }
 0x17b   : > { %v591_v9 = vadd.f32 %v590_v8, %v589_v7 }
 0x17d   : > { %592 = vadd.xlane.f32.xlu0 %v591_v9 }
 0x1f0   : > { %v593_v10 = vpop.xlane.xlu0 %592 }
 0x1f1   : > { %v594_v11 = vmul.f32 %v593_v10, %v585_v2 }
 0x1f3   : > { %v595_v12 = vadd.f32 1e-05, %v594_v11 }
 0x1f5   : > { %1098 = vrsqrt.f32 %v595_v12  ;;  %vm602_vm2 = vweird.f32 %v595_v12 }
 0x1fb   : > { %v1099_v13 = vpop.eup %1098 }
 0x1fc   : > { %v597_v14 = vmul.f32 %v1099_v13, %v595_v12  ;;  %vm603_vm1 = vweird.f32 %v1099_v13 }
 0x1fd   : > { %vm604_vm3 = vmor %vm602_vm2, %vm603_vm1 }
 0x1fe   : > { %v598_v15 = vmul.f32 %v1099_v13, %v597_v14 }
 0x200   : > { %v599_v16 = vmul.f32 0.5, %v598_v15 }
 0x202   : > { %v600_v18 = vsub.f32 1.5, %v599_v16 }
 0x204   : > { %v601_v20 = vmul.f32 %v1099_v13, %v600_v18 }
 0x206   : > { %v605_v23 = vsel %vm604_vm3, %v1099_v13, %v601_v20 }
 0x207   : > { %v606_v26 = vmul.f32 %v605_v23, %v587_v5  ;;  %v607_v27 = vmul.f32 %v605_v23, %v588_v6 }
 0x209   : > { %v613_v28 = vmul.f32 %v609_v21, %v606_v26  ;;  %v614_v29 = vmul.f32 %v610_v22, %v607_v27 }
 0x20b   : > { %v620_v30 = vadd.f32 %v616_v24, %v613_v28  ;;  %v621_v31 = vadd.f32 %v617_v25, %v614_v29 }
 0x20d   : > { %v624_v32 = vmul.f32 0.044715, %v620_v30  ;;  %v625_v33 = vmul.f32 0.044715, %v621_v31  ;;  %v622_v44 = vmul.f32 0.5, %v620_v30  ;;  %v623_v46 = vmul.f32 0.5, %v621_v31 }
 0x20f   : > { %v626_v34 = vmul.f32 %v624_v32, %v620_v30  ;;  %v627_v35 = vmul.f32 %v625_v33, %v621_v31 }
 0x211   : > { %v628_v36 = vmul.f32 %v626_v34, %v620_v30  ;;  %v629_v37 = vmul.f32 %v627_v35, %v621_v31 }
 0x213   : > { %v630_v38 = vadd.f32 %v628_v36, %v620_v30  ;;  %v631_v39 = vadd.f32 %v629_v37, %v621_v31 }
 0x215   : > { %v632_v40 = vmul.f32 0.7978846, %v630_v38  ;;  %v633_v41 = vmul.f32 0.7978846, %v631_v39 }
 0x217   : > { %1100 = vtanh.f32 %v632_v40 }
 0x218   : > { %1102 = vtanh.f32 %v633_v41 }
 0x21d   : > { %v1101_v42 = vpop.eup %1100 }
 0x21e   : > { %v1103_v43 = vpop.eup %1102  ;;  %v636_v45 = vadd.f32 1.0, %v1101_v42 }
 0x21f   : > { %v637_v47 = vadd.f32 1.0, %v1103_v43 }
 0x220   : > { %v638_v48 = vmul.f32 %v636_v45, %v622_v44 }
 0x221   : > { %v639_v49 = vmul.f32 %v637_v47, %v623_v46 }
 0x222   : > { %640 = vst [vmem:[%s423_s5] sm:$0xff] %v638_v48 }
 0x223   : > { %641 = vst [vmem:[%s423_s5 + $0x8] sm:$0xff] %v639_v49 }
 0x224   : > { %1281 = shalt.err (!%p1278_p10)
}
 0x225   : > { %957 = dma.vmem_to_hbm [thread:$0]  (%p1615_p3), %s659_s3, 256, %s661_s0, %s643_s20  }
 0x226 PF: > { %p980_p13 = scmp.ge.s32.totalorder %s1408_s6, 2  ;;  %s672_s10 = sand.u32 1, %s1356_s18  }
 0x227   : > { %s673_s1 = scalar_lea.sflag [#allocation5], %s672_s10 }
 0x228   : > { %p976_p11 = pnand %p980_p13, %p1619_p2 }
 0x22a   : > { %p977_p1 = pneg %p976_p11 }
 0x22c   : > { %1351 = dma.done.wait (%p977_p1), %s673_s1, 256  }
 0x22d   : > { %1353 = vsyncadd (%p977_p1), %s673_s1, 4294967040  ;;  %s27_s6 = sadd.s32 1, %s1408_s6   ;;  %s1840_s21 = sld [smem:[#allocation17_spill]] }
 0x22e   : > { %p1734_p4 = scmp.ge.s32.totalorder %s27_s6, 10   ;;  %s1841_s20 = sld [smem:[#allocation30_spill]] }
 0x22f   : > { %s1842_s28 = sld [smem:[#allocation18_spill]]  ;;  %s1852_s18 = smov %s1360_s19 }
 0x230   : > { %s1843_s23 = sld [smem:[#allocation29_spill]] }
 0x231   : > { %s1844_s24 = sld [smem:[#allocation19_spill]] }
 0x232   : > { %s1845_s25 = sld [smem:[#allocation20_spill]] }
 0x233   : > { %s1846_s26 = sld [smem:[#allocation28_spill]]  ;;  %s1853_s19 = smov %s1840_s21 }
 0x234   : > { %s1847_s27 = sld [smem:[#allocation23_spill]]  ;;  %s1854_s21 = smov %s1372_s22 }
 0x235   : > { %s1848_s8 = sld [smem:[#allocation24_spill]]  ;;  %s1855_s22 = smov %s1842_s28 }
 0x236   : > { %s1849_s29 = sld [smem:[#allocation26_spill]] }
 0x237   : > { %s1850_s17 = sld [smem:[#allocation27_spill]] }
 0x239   :  { %26 = sbr.rel (!%p1734_p4) target bundleno = 20 (0x14), region = 141 }
 0x23b   : > { %s1856_s28 = smov %s1848_s8 }
 0x23d   : > { %s1857_s30 = smov %s1850_s17 }
 0x23e   :  { %679 = vsyncpa [#allocation4], 1 }
 0x23f   :  { %681 = vsyncpa [#allocation4 + $0x1], 1 }
 0x240   :  { %682 = vsyncpa [#allocation7], 1 }
 0x241   :  { %684 = vsyncpa [#allocation7 + $0x1], 1 }
 0x242   :  { %685 = vsyncpa [#allocation10], 1 }
 0x243   :  { %687 = vsyncpa [#allocation10 + $0x1], 1 }
 0x244   :  { %688 = vsyncpa [#allocation5], 1 }
 0x245   :  { %690 = vsyncpa [#allocation5 + $0x1], 1 }

</bundles_post_ra>
